<compile_context>
chip_gen: v7x
topology: tpu7x:2x2x1
jax: 0.10.0
libtpu: 0.0.40
codegen_flags: <defaults>
</compile_context>

<pallas_src>
import functools
import math

import jax
import jax.numpy as jnp
from jax import lax
from jax.experimental import pallas as pl
from jax.experimental.pallas import tpu as pltpu


def _fnp_forward_kernel(x_ref, w_ref, o_ref, *, inv_temperature, num_groups, batch):
    # x_ref: (G*B, D)  all belief vectors, rows ordered g*B + b
    # w_ref: (N, D)    shared nn.Linear weight (out_features, in_features)
    # o_ref: (G, B, N) torch-layout probabilities
    x = x_ref[...]
    w = w_ref[...]

    # logits = x @ W.T, contracting over D directly (no W.T materialization).
    # One MXU matmul for every group at once.
    logits = lax.dot_general(
        x, w,
        dimension_numbers=(((1,), (1,)), ((), ())),
        preferred_element_type=jnp.float32,
    )  # (G*B, N)

    z = logits * inv_temperature

    # torch.softmax(..., dim=0) is over the batch axis of each strategy
    # instance.  Rows are ordered g*B + b, so splitting the sublane dim into
    # (G, B) is a tile-aligned, layout-preserving reshape; the reduce over
    # axis=1 is a sublane-group (XLU) reduction.
    z = z.reshape(num_groups, batch, z.shape[-1])          # (G, B, N)
    m = jnp.max(z, axis=1, keepdims=True)                  # (G, 1, N)
    e = jnp.exp(z - m)
    s = jnp.sum(e, axis=1, keepdims=True)                  # (G, 1, N)
    # Exact divide: keeps each group's column summing to 1 to f32 precision
    # (these probabilities feed Categorical sampling downstream).
    o_ref[...] = (e / s).astype(o_ref.dtype)


def fictitious_neural_play_forward(x, weight, temperature=1.0):
    """Forward pass of FictitiousNeuralPlayStrategy.

    x:      (G, B, D) or (B, D) belief-vector batches.  The softmax is taken
            over the B axis per group, matching torch.softmax(..., dim=0).
    weight: (N, D) nn.Linear weight (out_features, in_features).
    returns probabilities of shape (G, B, N) (or (B, N) if x was 2-D).
    """
    squeeze_group = (x.ndim == 2)
    if squeeze_group:
        x = x[None]
    G, B, D = x.shape
    N, D2 = weight.shape
    assert D == D2, "in_features mismatch"

    x = x.astype(jnp.float32)
    weight = weight.astype(jnp.float32)

    # NOTE: evaluated at trace time; temperature=0 raises here instead of
    # producing inf/NaN like the PyTorch reference would, and changing the
    # temperature triggers a retrace.
    inv_t = float(1.0 / temperature)

    # Free, contiguous reshape (no transpose): rows ordered g*B + b.
    x2 = x.reshape(G * B, D)

    kernel = functools.partial(
        _fnp_forward_kernel,
        inv_temperature=inv_t,
        num_groups=G,
        batch=B,
    )

    probs = pl.pallas_call(
        kernel,
        out_shape=jax.ShapeDtypeStruct((G, B, N), jnp.float32),
        # Single invocation (no grid): whole arrays live in VMEM.
        in_specs=[
            pl.BlockSpec(memory_space=pltpu.MemorySpace.VMEM),
            pl.BlockSpec(memory_space=pltpu.MemorySpace.VMEM),
        ],
        out_specs=pl.BlockSpec(memory_space=pltpu.MemorySpace.VMEM),
    )(x2, weight)

    return probs[0] if squeeze_group else probs


def reference_forward(x, weight, temperature=1.0):
    # x: (..., B, D), weight: (N, D); softmax over the batch axis per group.
    logits = jnp.einsum("...bd,nd->...bn", x, weight)
    z = logits / temperature
    return jax.nn.softmax(z, axis=-2)


if __name__ == "__main__":
    key = jax.random.PRNGKey(0)
    k_beliefs, k_w, k_x = jax.random.split(key, 3)

    # Module-implied shapes (small, synthetic):
    #   beliefs: (2, 3) -> flattened -> in_features D = 6
    #   n_actions N = 4
    #   B = 8 belief vectors per forward (softmax over this axis)
    #   G = 16 batched strategy instances / timesteps in one pallas_call
    n_actions = 4
    beliefs = jax.random.uniform(k_beliefs, (2, 3), dtype=jnp.float32).reshape(-1)
    D = beliefs.shape[0]
    B = 8
    G = 16

    # Deterministic weight init mimicking nn.Linear default: U(-1/sqrt(D), 1/sqrt(D))
    bound = 1.0 / math.sqrt(D)
    weight = jax.random.uniform(
        k_w, (n_actions, D), dtype=jnp.float32, minval=-bound, maxval=bound
    )

    # Example inputs: belief vectors (first row of group 0 is the module's own beliefs)
    x = jax.random.uniform(k_x, (G, B, D), dtype=jnp.float32)
    x = x.at[0, 0].set(beliefs)

    probs = fictitious_neural_play_forward(x, weight, temperature=1.0)
    probs = jax.block_until_ready(probs)

    ref = reference_forward(x, weight, temperature=1.0)
    assert probs.shape == (G, B, n_actions)
    assert jnp.allclose(probs, ref, atol=1e-5, rtol=1e-5), "mismatch vs reference"
    # softmax is over the batch axis -> columns sum to 1 per strategy instance
    assert jnp.allclose(
        jnp.sum(probs, axis=1), jnp.ones((G, n_actions)), atol=1e-5
    ), "probabilities do not sum to 1 per group"

    # Single-call path (x: (B, D)) matches the torch forward() exactly.
    probs_single = jax.block_until_ready(
        fictitious_neural_play_forward(x[0], weight, temperature=1.0)
    )
    assert probs_single.shape == (B, n_actions)
    assert jnp.allclose(probs_single, ref[0], atol=1e-5, rtol=1e-5)

    # TODO(synk): play()/_update_distribution Categorical sampling is host/JAX-side
    # RNG, not part of the kernelized forward pass.
    print("KERNEL_OK")
</pallas_src>

<mosaic_0001>
module attributes {stable_mosaic.version = 11 : i64} {
  func.func @_fnp_forward_kernel(%arg0: memref<128x6xf32, #tpu.memory_space<vmem>>, %arg1: memref<4x6xf32, #tpu.memory_space<vmem>>, %arg2: memref<16x8x4xf32, #tpu.memory_space<vmem>>) attributes {dimension_semantics = [], scalar_prefetch = 0 : i64, scratch_operands = 0 : i64, tpu.core_type = #tpu.core_type<tc>} {
    %c0 = arith.constant 0 : index
    %c0_0 = arith.constant 0 : index
    %0 = vector.load %arg0[%c0, %c0_0] : memref<128x6xf32, #tpu.memory_space<vmem>>, vector<128x6xf32>
    %c0_1 = arith.constant 0 : index
    %c0_2 = arith.constant 0 : index
    %1 = vector.load %arg1[%c0_1, %c0_2] : memref<4x6xf32, #tpu.memory_space<vmem>>, vector<4x6xf32>
    %cst = arith.constant dense<0.000000e+00> : vector<128x4xf32>
    %2 = tpu.matmul %0, %1, %cst {dimension_numbers = #tpu.dot_dimension_numbers<[1], [1], [0], [0], [0, 0, 1, 0], [], []>} : vector<128x6xf32>, vector<4x6xf32>, vector<128x4xf32> -> vector<128x4xf32>
    %cst_3 = arith.constant 1.000000e+00 : f32
    %3 = vector.broadcast %cst_3 : f32 to vector<128x4xf32>
    %4 = arith.mulf %2, %3 : vector<128x4xf32>
    %5 = vector.shape_cast %4 : vector<128x4xf32> to vector<16x8x4xf32>
    %cst_4 = arith.constant dense<0xFF800000> : vector<16x4xf32>
    %6 = vector.multi_reduction <maximumf>, %5, %cst_4 [1] : vector<16x8x4xf32> to vector<16x4xf32>
    %7 = vector.shape_cast %6 : vector<16x4xf32> to vector<16x1x4xf32>
    %8 = vector.broadcast %7 : vector<16x1x4xf32> to vector<16x8x4xf32>
    %9 = arith.subf %5, %8 : vector<16x8x4xf32>
    %10 = math.exp %9 : vector<16x8x4xf32>
    %cst_5 = arith.constant dense<0.000000e+00> : vector<16x4xf32>
    %11 = vector.multi_reduction <add>, %10, %cst_5 [1] : vector<16x8x4xf32> to vector<16x4xf32>
    %12 = vector.shape_cast %11 : vector<16x4xf32> to vector<16x1x4xf32>
    %13 = vector.broadcast %12 : vector<16x1x4xf32> to vector<16x8x4xf32>
    %14 = arith.divf %10, %13 : vector<16x8x4xf32>
    %c0_6 = arith.constant 0 : index
    %c0_7 = arith.constant 0 : index
    %c0_8 = arith.constant 0 : index
    %15 = vector.load %arg2[%c0_6, %c0_7, %c0_8] : memref<16x8x4xf32, #tpu.memory_space<vmem>>, vector<16x8x4xf32>
    tpu.vector_store %arg2[%c0_6, %c0_7, %c0_8], %14 {strides = array<i32>} : memref<16x8x4xf32, #tpu.memory_space<vmem>>, vector<16x8x4xf32>,
    return
  }
}

</mosaic_0001>

<bundles_post_ra>
// kernel: tpu_custom_call.1
= control target key start
LH: loop header
LB: loop body
LE: loop exit
PB: predicated region body
PF: predicated region fallthrough
CT: control target
= control target key end

     0   :  { %vm28_vm0 = vcmask 48128   ;;  %vm225_vm1 = vcmask 31744   ;;  %s998_s1 = inlined_call_operand.vmem [shape: f32[4,6], index: 1, kind: input, shape index: {}]   ;;  %s999_s0 = inlined_call_operand.vmem [shape: f32[128,6], index: 0, kind: input, shape index: {}]   ;;  %s1000_s2 = inlined_call_operand.vmem [shape: f32[16,8,4], index: 2, kind: output, shape index: {}]  }
   0x1   :  { %v27_v0 = vld [vmem:[%s998_s1] sm:$0xf]  ;;  %v12_v3 = vld [vmem:[%s999_s0 + $0x8] sm:$0xff]  ;;  %v13_v5 = vld [vmem:[%s999_s0 + $0x10] sm:$0xff] }
   0x2   :  { %v11_v1 = vld [vmem:[%s999_s0] sm:$0xff]  ;;  %584 = vmatprep.subr.msk.mxu0 %vm28_vm0, %v27_v0  ;;  %610 = vmatprep.subr.msk.mxu1 %vm28_vm0, %v27_v0  ;;  %v20_v4 = vld [vmem:[%s999_s0 + $0x48] sm:$0xff]  ;;  %v21_v6 = vld [vmem:[%s999_s0 + $0x50] sm:$0xff] }
   0x3   :  { %v19_v2 = vld [vmem:[%s999_s0 + $0x40] sm:$0xff]  ;;  %585 = vmatpush3.xpose.msk.msra.mxu0 %vm28_vm0, %v27_v0  ;;  %611 = vmatpush3.xpose.msk.msra.mxu1 %vm28_vm0, %v27_v0  ;;  %v14_v7 = vld [vmem:[%s999_s0 + $0x18] sm:$0xff]  ;;  %v16_v11 = vld [vmem:[%s999_s0 + $0x28] sm:$0xff] }
   0x4   :  { %586 = vmatprep.mubr.msk.f32.mxu0 %vm28_vm0, %v11_v1  ;;  %598 = vmatprep.mubr.msk.f32.mxu1 %vm28_vm0, %v19_v2  ;;  %v22_v8 = vld [vmem:[%s999_s0 + $0x58] sm:$0xff]  ;;  %v15_v9 = vld [vmem:[%s999_s0 + $0x20] sm:$0xff]  ;;  %v24_v12 = vld [vmem:[%s999_s0 + $0x68] sm:$0xff] }
   0x5   :  { %v23_v10 = vld [vmem:[%s999_s0 + $0x60] sm:$0xff]  ;;  %v17_v13 = vld [vmem:[%s999_s0 + $0x30] sm:$0xff]  ;;  %v18_v15 = vld [vmem:[%s999_s0 + $0x38] sm:$0xff] }
   0x6   :  { %587 = vmatmul.mubr.msk.f32.vlgmr.msra.gmra.mrb[0].mxu0 %vm28_vm0, %v12_v3  ;;  %599 = vmatmul.mubr.msk.f32.vlgmr.msra.gmra.mrb[0].mxu1 %vm28_vm0, %v20_v4  ;;  %v25_v14 = vld [vmem:[%s999_s0 + $0x70] sm:$0xff]  ;;  %v26_v16 = vld [vmem:[%s999_s0 + $0x78] sm:$0xff] }
   0x7   :  { %589 = vmatprep.mubr.msk.f32.mxu0 %vm28_vm0, %v13_v5  ;;  %601 = vmatprep.mubr.msk.f32.mxu1 %vm28_vm0, %v21_v6 }
   0xa   :  { %590 = vmatmul.mubr.msk.f32.gmra.mrb[2].mxu0 %vm28_vm0, %v14_v7  ;;  %602 = vmatmul.mubr.msk.f32.gmra.mrb[2].mxu1 %vm28_vm0, %v22_v8 }
   0xb   :  { %592 = vmatprep.mubr.msk.f32.mxu0 %vm28_vm0, %v15_v9  ;;  %604 = vmatprep.mubr.msk.f32.mxu1 %vm28_vm0, %v23_v10 }
   0xe   :  { %593 = vmatmul.mubr.msk.f32.gmra.mrb[4].mxu0 %vm28_vm0, %v16_v11  ;;  %605 = vmatmul.mubr.msk.f32.gmra.mrb[4].mxu1 %vm28_vm0, %v24_v12 }
   0xf   :  { %595 = vmatprep.mubr.msk.f32.mxu0 %vm28_vm0, %v17_v13  ;;  %607 = vmatprep.mubr.msk.f32.mxu1 %vm28_vm0, %v25_v14 }
  0x12   :  { %596 = vmatmul.mubr.msk.f32.gmra.mrb[6].mxu0 %vm28_vm0, %v18_v15  ;;  %608 = vmatmul.mubr.msk.f32.gmra.mrb[6].mxu1 %vm28_vm0, %v26_v16 }
  0xd9   :  { %v762_v17 = vpop.f32.mrb[0].mxu0  ;;  %v764_v18 = vpop.f32.mrb[0].mxu1 }
  0xda   :  { %v233_v19 = vsel %vm225_vm1, %v762_v17, -inf  ;;  %v289_v20 = vsel %vm225_vm1, %v764_v18, -inf  ;;  %v770_v21 = vpop.f32.mrb[1].mxu0  ;;  %v772_v22 = vpop.f32.mrb[1].mxu1 }
  0xdb   :  { %v234_v23 = vrot.slane %v233_v19, 4  ;;  %v290_v24 = vrot.slane %v289_v20, 4  ;;  %v226_v25 = vsel %vm225_vm1, %v770_v21, -inf  ;;  %v282_v26 = vsel %vm225_vm1, %v772_v22, -inf }
  0xdc   :  { %v227_v27 = vrot.slane %v226_v25, 4  ;;  %v283_v28 = vrot.slane %v282_v26, 4 }
  0xdd   :  { %v235_v29 = vmax.f32 %v233_v19, %v234_v23  ;;  %v291_v30 = vmax.f32 %v289_v20, %v290_v24  ;;  %v778_v31 = vpop.f32.mrb[2].mxu0  ;;  %v780_v32 = vpop.f32.mrb[2].mxu1 }
  0xde   :  { %v228_v33 = vmax.f32 %v226_v25, %v227_v27  ;;  %v284_v34 = vmax.f32 %v282_v26, %v283_v28  ;;  %v247_v35 = vsel %vm225_vm1, %v778_v31, -inf  ;;  %v303_v36 = vsel %vm225_vm1, %v780_v32, -inf  ;;  %v786_v37 = vpop.f32.mrb[3].mxu0  ;;  %v788_v38 = vpop.f32.mrb[3].mxu1 }
  0xdf   :  { %v236_v39 = vrot.slane %v235_v29, 2  ;;  %v292_v40 = vrot.slane %v291_v30, 2  ;;  %v248_v41 = vrot.slane %v247_v35, 4  ;;  %v304_v42 = vrot.slane %v303_v36, 4 }
  0xe0   :  { %v229_v43 = vrot.slane %v228_v33, 2  ;;  %v285_v44 = vrot.slane %v284_v34, 2  ;;  %v240_v45 = vsel %vm225_vm1, %v786_v37, -inf  ;;  %v296_v46 = vsel %vm225_vm1, %v788_v38, -inf }
  0xe1   :  { %v237_v47 = vmax.f32 %v235_v29, %v236_v39  ;;  %v293_v48 = vmax.f32 %v291_v30, %v292_v40  ;;  %v249_v49 = vmax.f32 %v247_v35, %v248_v41  ;;  %v305_v50 = vmax.f32 %v303_v36, %v304_v42  ;;  %v794_v51 = vpop.f32.mrb[4].mxu0  ;;  %v796_v52 = vpop.f32.mrb[4].mxu1 }
  0xe2   :  { %v230_v53 = vmax.f32 %v228_v33, %v229_v43  ;;  %v286_v54 = vmax.f32 %v284_v34, %v285_v44  ;;  %v241_v55 = vrot.slane %v240_v45, 4  ;;  %v297_v56 = vrot.slane %v296_v46, 4  ;;  %v798_v57 = vpop.f32.mrb[5].mxu0  ;;  %v800_v58 = vpop.f32.mrb[5].mxu1 }
  0xe3   :  { %v238_v59 = vrot.slane %v237_v47, 1  ;;  %v294_v60 = vrot.slane %v293_v48, 1  ;;  %v250_v61 = vrot.slane %v249_v49, 2  ;;  %v306_v62 = vrot.slane %v305_v50, 2 }
  0xe4   :  { %v231_v63 = vrot.slane %v230_v53, 1  ;;  %v287_v0 = vrot.slane %v286_v54, 1  ;;  %v242_v1 = vmax.f32 %v240_v45, %v241_v55  ;;  %v298_v2 = vmax.f32 %v296_v46, %v297_v56 }
  0xe5   :  { %v239_v3 = vmax.f32 %v237_v47, %v238_v59  ;;  %v295_v4 = vmax.f32 %v293_v48, %v294_v60  ;;  %v251_v5 = vmax.f32 %v249_v49, %v250_v61  ;;  %v307_v6 = vmax.f32 %v305_v50, %v306_v62  ;;  %v802_v7 = vpop.f32.mrb[6].mxu0  ;;  %v804_v8 = vpop.f32.mrb[6].mxu1 }
  0xe6   :  { %v232_v9 = vmax.f32 %v230_v53, %v231_v63  ;;  %v288_v10 = vmax.f32 %v286_v54, %v287_v0  ;;  %v243_v11 = vrot.slane %v242_v1, 2  ;;  %v299_v12 = vrot.slane %v298_v2, 2  ;;  %v806_v13 = vpop.f32.mrb[7].mxu0  ;;  %v808_v14 = vpop.f32.mrb[7].mxu1 }
  0xe7   :  { %v339_v15 = vsub.f32 %v762_v17, %v239_v3  ;;  %v347_v16 = vsub.f32 %v764_v18, %v295_v4  ;;  %v252_v19 = vrot.slane %v251_v5, 1  ;;  %v308_v20 = vrot.slane %v307_v6, 1 }
  0xe8   :  { %v338_v23 = vsub.f32 %v770_v21, %v232_v9  ;;  %v346_v24 = vsub.f32 %v772_v22, %v288_v10  ;;  %v244_v25 = vmax.f32 %v242_v1, %v243_v11  ;;  %v300_v26 = vmax.f32 %v298_v2, %v299_v12 }
  0xe9   :  { %v356_v27 = vmul.f32 1.442695, %v339_v15  ;;  %v372_v28 = vmul.f32 1.442695, %v347_v16  ;;  %v253_v29 = vmax.f32 %v251_v5, %v252_v19  ;;  %v309_v30 = vmax.f32 %v307_v6, %v308_v20 }
  0xea   :  { %v354_v33 = vmul.f32 1.442695, %v338_v23  ;;  %v370_v34 = vmul.f32 1.442695, %v346_v24  ;;  %v245_v35 = vrot.slane %v244_v25, 1  ;;  %v301_v36 = vrot.slane %v300_v26, 1 }
  0xeb   :  { %612 = vpow2.f32 %v356_v27  ;;  %v341_v17 = vsub.f32 %v778_v31, %v253_v29  ;;  %v349_v18 = vsub.f32 %v780_v32, %v309_v30  ;;  %v261_v21 = vsel %vm225_vm1, %v794_v51, -inf }
  0xec   :  { %614 = vpow2.f32 %v372_v28  ;;  %v246_v22 = vmax.f32 %v244_v25, %v245_v35  ;;  %v302_v39 = vmax.f32 %v300_v26, %v301_v36  ;;  %v262_v40 = vrot.slane %v261_v21, 4 }
  0xed   :  { %616 = vpow2.f32 %v354_v33  ;;  %v360_v41 = vmul.f32 1.442695, %v341_v17  ;;  %v376_v42 = vmul.f32 1.442695, %v349_v18  ;;  %v317_v43 = vsel %vm225_vm1, %v796_v52, -inf }
  0xee   :  { %618 = vpow2.f32 %v370_v34  ;;  %v340_v44 = vsub.f32 %v786_v37, %v246_v22  ;;  %v348_v31 = vsub.f32 %v788_v38, %v302_v39  ;;  %v263_v45 = vmax.f32 %v261_v21, %v262_v40 }
  0xef   :  { %620 = vpow2.f32 %v360_v41  ;;  %v318_v32 = vrot.slane %v317_v43, 4  ;;  %v254_v46 = vsel %vm225_vm1, %v798_v57, -inf  ;;  %v310_v47 = vsel %vm225_vm1, %v800_v58, -inf }
  0xf0   :  { %622 = vpow2.f32 %v376_v42  ;;  %v358_v48 = vmul.f32 1.442695, %v340_v44  ;;  %v374_v49 = vmul.f32 1.442695, %v348_v31  ;;  %v264_v50 = vrot.slane %v263_v45, 2 }
  0xf1   :  { %v319_v53 = vmax.f32 %v317_v43, %v318_v32  ;;  %v255_v54 = vrot.slane %v254_v46, 4  ;;  %v311_v55 = vrot.slane %v310_v47, 4  ;;  %v275_v37 = vsel %vm225_vm1, %v802_v7, -inf }
  0xf2   :  { %624 = vpow2.f32 %v358_v48  ;;  %v265_v38 = vmax.f32 %v263_v45, %v264_v50  ;;  %v276_v56 = vrot.slane %v275_v37, 4  ;;  %v331_v59 = vsel %vm225_vm1, %v804_v8, -inf }
  0xf3   :  { %626 = vpow2.f32 %v374_v49  ;;  %v320_v60 = vrot.slane %v319_v53, 2  ;;  %v256_v61 = vmax.f32 %v254_v46, %v255_v54  ;;  %v312_v62 = vmax.f32 %v310_v47, %v311_v55 }
  0xf4   :  { %v266_v63 = vrot.slane %v265_v38, 1  ;;  %v830_v0 = vmax.f32 %v275_v37, %v276_v56  ;;  %v332_v1 = vrot.slane %v331_v59, 4  ;;  %v834_v2 = vsel %vm225_vm1, %v806_v13, -inf }
  0xf5   :  { %v836_v3 = vpop.eup %612  ;;  %v321_v4 = vmax.f32 %v319_v53, %v320_v60  ;;  %v257_v5 = vrot.slane %v256_v61, 2  ;;  %v313_v6 = vrot.slane %v312_v62, 2  ;;  %v269_v9 = vrot.slane %v834_v2, 4 }
  0xf6   :  { %v839_v10 = vpop.eup %614  ;;  %v393_v11 = vsel %vm225_vm1, %v836_v3, 0.0  ;;  %v267_v12 = vmax.f32 %v265_v38, %v266_v63  ;;  %v278_v15 = vrot.slane %v830_v0, 2  ;;  %v844_v16 = vmax.f32 %v331_v59, %v332_v1 }
  0xf7   :  { %v846_v19 = vpop.eup %616  ;;  %v394_v20 = vrot.slane %v393_v11, 4  ;;  %v449_v23 = vsel %vm225_vm1, %v839_v10, 0.0  ;;  %v322_v24 = vrot.slane %v321_v4, 1  ;;  %v850_v25 = vmax.f32 %v256_v61, %v257_v5 }
  0xf8   :  { %v852_v26 = vpop.eup %618  ;;  %v450_v27 = vrot.slane %v449_v23, 4  ;;  %v386_v28 = vsel %vm225_vm1, %v846_v19, 0.0  ;;  %v343_v29 = vsub.f32 %v794_v51, %v267_v12  ;;  %v857_v30 = vmax.f32 %v312_v62, %v313_v6 }
  0xf9   :  { %v859_v33 = vpop.eup %620  ;;  %v395_v34 = vadd.f32 %v394_v20, %v393_v11  ;;  %v387_v35 = vrot.slane %v386_v28, 4  ;;  %v442_v36 = vsel %vm225_vm1, %v852_v26, 0.0  ;;  %v323_v17 = vmax.f32 %v321_v4, %v322_v24 }
  0xfa   :  { %v863_v18 = vpop.eup %622  ;;  %v451_v21 = vadd.f32 %v450_v27, %v449_v23  ;;  %v443_v22 = vrot.slane %v442_v36, 4  ;;  %v407_v39 = vsel %vm225_vm1, %v859_v33, 0.0  ;;  %v364_v40 = vmul.f32 1.442695, %v343_v29 }
  0xfb   :  { %v396_v41 = vrot.slane %v395_v34, 2  ;;  %v388_v51 = vadd.f32 %v387_v35, %v386_v28  ;;  %v408_v42 = vrot.slane %v407_v39, 4  ;;  %v463_v43 = vsel %vm225_vm1, %v863_v18, 0.0 }
  0xfc   :  { %v869_v44 = vpop.eup %624  ;;  %v452_v31 = vrot.slane %v451_v21, 2  ;;  %v444_v45 = vadd.f32 %v443_v22, %v442_v36  ;;  %v464_v32 = vrot.slane %v463_v43, 4  ;;  %628 = vpow2.f32 %v364_v40 }
  0xfd   :  { %v871_v46 = vpop.eup %626  ;;  %v397_v47 = vadd.f32 %v396_v41, %v395_v34  ;;  %v389_v48 = vrot.slane %v388_v51, 2  ;;  %v409_v49 = vadd.f32 %v408_v42, %v407_v39  ;;  %v400_v50 = vsel %vm225_vm1, %v869_v44, 0.0 }
  0xfe   :  { %v453_v53 = vadd.f32 %v452_v31, %v451_v21  ;;  %v445_v54 = vrot.slane %v444_v45, 2  ;;  %v465_v55 = vadd.f32 %v464_v32, %v463_v43  ;;  %v401_v37 = vrot.slane %v400_v50, 4 }
  0xff   :  { %v398_v38 = vrot.slane %v397_v47, 1  ;;  %v390_v56 = vadd.f32 %v389_v48, %v388_v51  ;;  %v410_v59 = vrot.slane %v409_v49, 2  ;;  %v456_v60 = vsel %vm225_vm1, %v871_v46, 0.0 }
 0x100   :  { %v454_v61 = vrot.slane %v453_v53, 1  ;;  %v446_v62 = vadd.f32 %v445_v54, %v444_v45  ;;  %v466_v63 = vrot.slane %v465_v55, 2  ;;  %v402_v1 = vadd.f32 %v401_v37, %v400_v50 }
 0x101   :  { %v399_v4 = vadd.f32 %v398_v38, %v397_v47  ;;  %v391_v5 = vrot.slane %v390_v56, 1  ;;  %v411_v6 = vadd.f32 %v410_v59, %v409_v49  ;;  %v457_v11 = vrot.slane %v456_v60, 4 }
 0x102   :  { %v455_v12 = vadd.f32 %v454_v61, %v453_v53  ;;  %v447_v20 = vrot.slane %v446_v62, 1  ;;  %v467_v23 = vadd.f32 %v466_v63, %v465_v55  ;;  %v403_v24 = vrot.slane %v402_v1, 2 }
 0x103   :  { %630 = vrcp.f32 %v399_v4  ;;  %v392_v27 = vadd.f32 %v391_v5, %v390_v56  ;;  %v412_v28 = vrot.slane %v411_v6, 1  ;;  %v458_v29 = vadd.f32 %v457_v11, %v456_v60 }
 0x104   :  { %632 = vrcp.f32 %v455_v12  ;;  %v448_v34 = vadd.f32 %v447_v20, %v446_v62  ;;  %v468_v35 = vrot.slane %v467_v23, 1  ;;  %v404_v36 = vadd.f32 %v403_v24, %v402_v1 }
 0x105   :  { %634 = vrcp.f32 %v392_v27  ;;  %v413_v21 = vadd.f32 %v412_v28, %v411_v6  ;;  %v459_v22 = vrot.slane %v458_v29, 2  ;;  %v351_v39 = vsub.f32 %v796_v52, %v323_v17 }
 0x106   :  { %v878_v40 = vpop.eup %628  ;;  %636 = vrcp.f32 %v448_v34  ;;  %v469_v41 = vadd.f32 %v468_v35, %v467_v23  ;;  %v405_v51 = vrot.slane %v404_v36, 1  ;;  %v259_v42 = vrot.slane %v850_v25, 1 }
 0x107   :  { %638 = vrcp.f32 %v413_v21  ;;  %v460_v43 = vadd.f32 %v459_v22, %v458_v29  ;;  %v421_v31 = vsel %vm225_vm1, %v878_v40, 0.0  ;;  %v380_v45 = vmul.f32 1.442695, %v351_v39 }
 0x108   :  { %640 = vrcp.f32 %v469_v41  ;;  %v406_v32 = vadd.f32 %v405_v51, %v404_v36  ;;  %v422_v47 = vrot.slane %v421_v31, 4  ;;  %v260_v48 = vmax.f32 %v850_v25, %v259_v42 }
 0x109   :  { %v461_v49 = vrot.slane %v460_v43, 1  ;;  %642 = vpow2.f32 %v380_v45  ;;  %v315_v52 = vrot.slane %v857_v30, 1  ;;  %v279_v17 = vmax.f32 %v830_v0, %v278_v15 }
 0x10a   :  { %644 = vrcp.f32 %v406_v32  ;;  %v423_v50 = vadd.f32 %v422_v47, %v421_v31  ;;  %v342_v53 = vsub.f32 %v798_v57, %v260_v48  ;;  %v334_v54 = vrot.slane %v844_v16, 2 }
 0x10b   :  { %v462_v55 = vadd.f32 %v461_v49, %v460_v43  ;;  %v316_v37 = vmax.f32 %v857_v30, %v315_v52  ;;  %v280_v38 = vrot.slane %v279_v17, 1  ;;  %v270_v25 = vmax.f32 %v834_v2, %v269_v9 }
 0x10c   :  { %v424_v56 = vrot.slane %v423_v50, 2  ;;  %v362_v59 = vmul.f32 1.442695, %v342_v53  ;;  %v335_v60 = vmax.f32 %v844_v16, %v334_v54  ;;  %v324_v0 = vsel %vm225_vm1, %v808_v14, -inf }
 0x10d   :  { %v631_v15 = vpop.eup %630  ;;  %646 = vrcp.f32 %v462_v55  ;;  %v350_v57 = vsub.f32 %v800_v58, %v316_v37  ;;  %v281_v61 = vmax.f32 %v279_v17, %v280_v38  ;;  %v271_v62 = vrot.slane %v270_v25, 2 }
 0x10e   :  { %v633_v63 = vpop.eup %632  ;;  %v501_v30 = vmul.f32 %v631_v15, %v836_v3  ;;  %v425_v1 = vadd.f32 %v424_v56, %v423_v50  ;;  %648 = vpow2.f32 %v362_v59  ;;  %v336_v4 = vrot.slane %v335_v60, 1 }
 0x10f   :  { %v635_v2 = vpop.eup %634  ;;  %v517_v9 = vmul.f32 %v633_v63, %v839_v10  ;;  %v378_v5 = vmul.f32 1.442695, %v350_v57  ;;  %v345_v16 = vsub.f32 %v802_v7, %v281_v61  ;;  %v272_v6 = vmax.f32 %v270_v25, %v271_v62 }
 0x110   :  { %v637_v11 = vpop.eup %636  ;;  %531 = vst.msk [vmem:[%s1000_s2 + $0x8] sm:$0xff] %vm225_vm1, %v501_v30  ;;  %v499_v58 = vmul.f32 %v635_v2, %v846_v19  ;;  %v426_v12 = vrot.slane %v425_v1, 1  ;;  %v337_v3 = vmax.f32 %v335_v60, %v336_v4  ;;  %v325_v20 = vrot.slane %v324_v0, 4 }
 0x111   :  { %v639_v23 = vpop.eup %638  ;;  %539 = vst.msk [vmem:[%s1000_s2 + $0x48] sm:$0xff] %vm225_vm1, %v517_v9  ;;  %v515_v7 = vmul.f32 %v637_v11, %v852_v26  ;;  %650 = vpow2.f32 %v378_v5  ;;  %v368_v10 = vmul.f32 1.442695, %v345_v16  ;;  %v273_v24 = vrot.slane %v272_v6, 1 }
 0x112   :  { %v641_v27 = vpop.eup %640  ;;  %530 = vst.msk [vmem:[%s1000_s2] sm:$0xff] %vm225_vm1, %v499_v58  ;;  %v505_v19 = vmul.f32 %v639_v23, %v859_v33  ;;  %v427_v28 = vadd.f32 %v426_v12, %v425_v1  ;;  %v353_v29 = vsub.f32 %v804_v8, %v337_v3  ;;  %v326_v34 = vmax.f32 %v324_v0, %v325_v20 }
 0x113   :  { %v917_v35 = vpop.eup %642  ;;  %538 = vst.msk [vmem:[%s1000_s2 + $0x40] sm:$0xff] %vm225_vm1, %v515_v7  ;;  %v521_v26 = vmul.f32 %v641_v27, %v863_v18  ;;  %652 = vpow2.f32 %v368_v10  ;;  %v274_v36 = vmax.f32 %v272_v6, %v273_v24 }
 0x114   :  { %v645_v21 = vpop.eup %644  ;;  %533 = vst.msk [vmem:[%s1000_s2 + $0x18] sm:$0xff] %vm225_vm1, %v505_v19  ;;  %654 = vrcp.f32 %v427_v28  ;;  %v477_v8 = vsel %vm225_vm1, %v917_v35, 0.0  ;;  %v384_v33 = vmul.f32 1.442695, %v353_v29  ;;  %v327_v22 = vrot.slane %v326_v34, 2 }
 0x115   :  { %541 = vst.msk [vmem:[%s1000_s2 + $0x58] sm:$0xff] %vm225_vm1, %v521_v26  ;;  %v503_v18 = vmul.f32 %v645_v21, %v869_v44  ;;  %v478_v39 = vrot.slane %v477_v8, 4  ;;  %v344_v41 = vsub.f32 %v806_v13, %v274_v36 }
 0x116   :  { %656 = vpow2.f32 %v384_v33  ;;  %v328_v51 = vmax.f32 %v326_v34, %v327_v22 }
 0x117   :  { %v647_v42 = vpop.eup %646  ;;  %532 = vst.msk [vmem:[%s1000_s2 + $0x10] sm:$0xff] %vm225_vm1, %v503_v18  ;;  %v479_v43 = vadd.f32 %v478_v39, %v477_v8  ;;  %v366_v31 = vmul.f32 1.442695, %v344_v41 }
 0x118   :  { %v940_v45 = vpop.eup %648  ;;  %v519_v32 = vmul.f32 %v647_v42, %v871_v46  ;;  %v329_v47 = vrot.slane %v328_v51, 1 }
 0x119   :  { %v480_v48 = vrot.slane %v479_v43, 2  ;;  %v414_v44 = vsel %vm225_vm1, %v940_v45, 0.0  ;;  %658 = vpow2.f32 %v366_v31 }
 0x11a   :  { %540 = vst.msk [vmem:[%s1000_s2 + $0x50] sm:$0xff] %vm225_vm1, %v519_v32  ;;  %v415_v13 = vrot.slane %v414_v44, 4  ;;  %v330_v49 = vmax.f32 %v328_v51, %v329_v47 }
 0x11b   :  { %v949_v52 = vpop.eup %650  ;;  %v481_v17 = vadd.f32 %v480_v48, %v479_v43 }
 0x11c   :  { %v416_v50 = vadd.f32 %v415_v13, %v414_v44  ;;  %v470_v46 = vsel %vm225_vm1, %v949_v52, 0.0  ;;  %v352_v53 = vsub.f32 %v808_v14, %v330_v49 }
 0x11d   :  { %v954_v54 = vpop.eup %652  ;;  %v482_v55 = vrot.slane %v481_v17, 1  ;;  %v471_v37 = vrot.slane %v470_v46, 4 }
 0x11e   :  { %v655_v38 = vpop.eup %654  ;;  %v417_v25 = vrot.slane %v416_v50, 2  ;;  %v435_v56 = vsel %vm225_vm1, %v954_v54, 0.0  ;;  %v382_v59 = vmul.f32 1.442695, %v352_v53 }
 0x11f   :  { %v509_v60 = vmul.f32 %v655_v38, %v878_v40  ;;  %v483_v0 = vadd.f32 %v482_v55, %v481_v17  ;;  %v472_v15 = vadd.f32 %v471_v37, %v470_v46  ;;  %v436_v57 = vrot.slane %v435_v56, 4 }
 0x120   :  { %v657_v61 = vpop.eup %656  ;;  %v418_v62 = vadd.f32 %v417_v25, %v416_v50  ;;  %660 = vpow2.f32 %v382_v59 }
 0x121   :  { %535 = vst.msk [vmem:[%s1000_s2 + $0x28] sm:$0xff] %vm225_vm1, %v509_v60  ;;  %662 = vrcp.f32 %v483_v0  ;;  %v473_v14 = vrot.slane %v472_v15, 2  ;;  %v437_v63 = vadd.f32 %v436_v57, %v435_v56  ;;  %v491_v30 = vsel %vm225_vm1, %v657_v61, 0.0 }
 0x122   :  { %v419_v1 = vrot.slane %v418_v62, 1  ;;  %v492_v4 = vrot.slane %v491_v30, 4 }
 0x123   :  { %v659_v2 = vpop.eup %658  ;;  %v474_v40 = vadd.f32 %v473_v14, %v472_v15  ;;  %v438_v9 = vrot.slane %v437_v63, 2 }
 0x124   :  { %v420_v5 = vadd.f32 %v419_v1, %v418_v62  ;;  %v493_v16 = vadd.f32 %v492_v4, %v491_v30  ;;  %v428_v6 = vsel %vm225_vm1, %v659_v2, 0.0 }
 0x125   :  { %v475_v11 = vrot.slane %v474_v40, 1  ;;  %v439_v58 = vadd.f32 %v438_v9, %v437_v63  ;;  %v429_v12 = vrot.slane %v428_v6, 4 }
 0x126   :  { %664 = vrcp.f32 %v420_v5  ;;  %v494_v3 = vrot.slane %v493_v16, 2 }
 0x127   :  { %v476_v20 = vadd.f32 %v475_v11, %v474_v40  ;;  %v440_v23 = vrot.slane %v439_v58, 1  ;;  %v430_v7 = vadd.f32 %v429_v12, %v428_v6 }
 0x128   :  { %v495_v10 = vadd.f32 %v494_v3, %v493_v16 }
 0x129   :  { %666 = vrcp.f32 %v476_v20  ;;  %v441_v24 = vadd.f32 %v440_v23, %v439_v58  ;;  %v431_v27 = vrot.slane %v430_v7, 2 }
 0x12a   :  { %v661_v19 = vpop.eup %660  ;;  %v496_v28 = vrot.slane %v495_v10, 1 }
 0x12b   :  { %v663_v29 = vpop.eup %662  ;;  %668 = vrcp.f32 %v441_v24  ;;  %v432_v34 = vadd.f32 %v431_v27, %v430_v7  ;;  %v484_v26 = vsel %vm225_vm1, %v661_v19, 0.0 }
 0x12c   :  { %v525_v36 = vmul.f32 %v663_v29, %v917_v35  ;;  %v497_v21 = vadd.f32 %v496_v28, %v495_v10  ;;  %v485_v8 = vrot.slane %v484_v26, 4 }
 0x12d   :  { %v433_v33 = vrot.slane %v432_v34, 1 }
 0x12e   :  { %543 = vst.msk [vmem:[%s1000_s2 + $0x68] sm:$0xff] %vm225_vm1, %v525_v36  ;;  %670 = vrcp.f32 %v497_v21  ;;  %v486_v22 = vadd.f32 %v485_v8, %v484_v26 }
 0x12f   :  { %v434_v18 = vadd.f32 %v433_v33, %v432_v34 }
 0x130   :  { %v665_v39 = vpop.eup %664  ;;  %v487_v41 = vrot.slane %v486_v22, 2 }
 0x131   :  { %v507_v51 = vmul.f32 %v665_v39, %v940_v45  ;;  %672 = vrcp.f32 %v434_v18 }
 0x132   :  { %v488_v42 = vadd.f32 %v487_v41, %v486_v22 }
 0x133   :  { %v667_v43 = vpop.eup %666  ;;  %534 = vst.msk [vmem:[%s1000_s2 + $0x20] sm:$0xff] %vm225_vm1, %v507_v51 }
 0x134   :  { %v523_v35 = vmul.f32 %v667_v43, %v949_v52  ;;  %v489_v31 = vrot.slane %v488_v42, 1 }
 0x135   :  { %v669_v32 = vpop.eup %668 }
 0x136   :  { %542 = vst.msk [vmem:[%s1000_s2 + $0x60] sm:$0xff] %vm225_vm1, %v523_v35  ;;  %v513_v47 = vmul.f32 %v669_v32, %v954_v54  ;;  %v490_v45 = vadd.f32 %v489_v31, %v488_v42 }
 0x138   :  { %v671_v48 = vpop.eup %670  ;;  %537 = vst.msk [vmem:[%s1000_s2 + $0x38] sm:$0xff] %vm225_vm1, %v513_v47  ;;  %674 = vrcp.f32 %v490_v45 }
 0x139   :  { %v529_v44 = vmul.f32 %v671_v48, %v657_v61 }
 0x13b   :  { %v673_v13 = vpop.eup %672  ;;  %545 = vst.msk [vmem:[%s1000_s2 + $0x78] sm:$0xff] %vm225_vm1, %v529_v44 }
 0x13c   :  { %v511_v49 = vmul.f32 %v673_v13, %v659_v2 }
 0x13e   :  { %536 = vst.msk [vmem:[%s1000_s2 + $0x30] sm:$0xff] %vm225_vm1, %v511_v49 }
 0x142   :  { %v675_v52 = vpop.eup %674 }
 0x143   :  { %v527_v17 = vmul.f32 %v675_v52, %v661_v19 }
 0x145   :  { %544 = vst.msk [vmem:[%s1000_s2 + $0x70] sm:$0xff] %vm225_vm1, %v527_v17 }

</bundles_post_ra>
